<compile_context>
chip_gen: v7x
topology: tpu7x:2x2x1
jax: 0.10.0
libtpu: 0.0.40
codegen_flags: <defaults>
</compile_context>

<pallas_src>
import numpy as np

import jax
import jax.numpy as jnp
from jax.experimental import pallas as pl
from jax.experimental.pallas import tpu as pltpu


def _round_up(x, m):
    return ((x + m - 1) // m) * m


def _block_diag(w, fold):
    """(k, n) -> (fold*k, fold*n) block-diagonal with `w` on the diagonal."""
    if fold == 1:
        return w
    k, n = w.shape
    eye = jnp.eye(fold, dtype=w.dtype)
    return (eye[:, None, :, None] * w[None, :, None, :]).reshape(fold * k, fold * n)


def embed_edge_kernel(x_ref, w1_ref, b1_ref, w2_ref, b2_ref, o_ref):
    # First linear (MXU, f32 accumulation).
    h = jnp.dot(x_ref[...], w1_ref[...],
                preferred_element_type=jnp.float32) + b1_ref[...]
    # sigmoid(h) == 0.5 * (tanh(h/2) + 1): one EUP op, keeps the divide off the
    # VALU entirely (no Newton iterations), exact vs. jax.nn.sigmoid.
    h = 0.5 * (jnp.tanh(0.5 * h) + 1.0)
    # Second linear + tanh, cast only at the store (enables cheap bf16 writeback).
    o = jnp.dot(h, w2_ref[...],
                preferred_element_type=jnp.float32) + b2_ref[...]
    o_ref[...] = jnp.tanh(o).astype(o_ref.dtype)


def embed_edge(edges, w1, b1, w2, b2, *, fold=2, tm_cap=4096,
               out_dtype=None, vmem_limit_bytes=32 * 1024 * 1024):
    """edges: (B, n_max, n_max, edge_dim) -> (B, n_max, n_max, hidden, hidden).

    fold:     rows packed per compute row (lane-dense output). Reduced
              automatically if it does not divide B*n_max*n_max.
    tm_cap:   max row tile (multiple of 8). 4096 f32 ~ 8 MiB of double-buffered
              tiles; sweep 2048-8192 per generation if desired.
    out_dtype: output dtype (default: edges.dtype). jnp.bfloat16 halves the
              dominant writeback traffic on this memory-bound kernel.
    """
    B, n_max, n_max2, edge_dim = edges.shape
    two_h = w1.shape[1]
    hh = w2.shape[1]
    hidden = int(round(hh ** 0.5))
    assert hidden * hidden == hh
    out_dtype = edges.dtype if out_dtype is None else jnp.dtype(out_dtype)

    M = B * n_max * n_max2

    # Pick the largest fold <= requested that divides M (fold=1 always works).
    fold = max(1, int(fold))
    while M % fold != 0:
        fold -= 1

    kx = fold * edge_dim          # folded input width
    kh = fold * two_h             # folded hidden width
    kn = fold * hh                # folded output width (lane-dense for fold>=2)

    # Fold `fold` consecutive logical rows into one compute row; block-diagonal
    # weights make the folded matmul mathematically identical to the per-row one.
    m_rows = M // fold
    x = edges.reshape(m_rows, kx)
    w1f = _block_diag(w1, fold)
    w2f = _block_diag(w2, fold)
    b1f = jnp.tile(b1, fold).reshape(1, kh)
    b2f = jnp.tile(b2, fold).reshape(1, kn)

    # Row tile: multiple of 8 (f32 sublane), capped by tm_cap, and sized so the
    # grid keeps >= ~8 steps when the problem allows (v7x megacore balance).
    tm = min(tm_cap, max(8, _round_up(pl.cdiv(m_rows, 8), 8)))
    m_padded = _round_up(m_rows, tm)
    if m_padded != m_rows:
        x = jnp.pad(x, ((0, m_padded - m_rows), (0, 0)))
    grid = (m_padded // tm,)

    in_bytes = edges.dtype.itemsize
    out_bytes = np.dtype(out_dtype).itemsize
    cost = pl.CostEstimate(
        flops=2 * M * (edge_dim * two_h + two_h * hh),
        transcendentals=M * (two_h + hh),
        bytes_accessed=M * (edge_dim * in_bytes + hh * out_bytes)
        + (w1.size + b1.size + w2.size + b2.size) * w1.dtype.itemsize,
    )

    out = pl.pallas_call(
        embed_edge_kernel,
        out_shape=jax.ShapeDtypeStruct((m_padded, kn), out_dtype),
        grid_spec=pltpu.PrefetchScalarGridSpec(
            num_scalar_prefetch=0,
            grid=grid,
            in_specs=[
                pl.BlockSpec((tm, kx), lambda i: (i, 0)),   # x row tile
                pl.BlockSpec((kx, kh), lambda i: (0, 0)),   # W1' (resident)
                pl.BlockSpec((1, kh), lambda i: (0, 0)),    # b1'
                pl.BlockSpec((kh, kn), lambda i: (0, 0)),   # W2' (resident)
                pl.BlockSpec((1, kn), lambda i: (0, 0)),    # b2'
            ],
            out_specs=pl.BlockSpec((tm, kn), lambda i: (i, 0)),
        ),
        compiler_params=pltpu.CompilerParams(
            dimension_semantics=("parallel",),
            vmem_limit_bytes=vmem_limit_bytes),
        cost_estimate=cost,
    )(x, w1f, b1f, w2f, b2f)

    out = out[:m_rows]  # drop padded rows
    # (m_rows, fold*hh) row-major is bit-identical to (M, hh) row-major.
    return out.reshape(B, n_max, n_max2, hidden, hidden)


def init_params(key, edge_dim, hidden_dim, dtype=jnp.float32):
    """Deterministic synthetic init (PyTorch nn.Linear-style uniform ranges)."""
    k1, k2, k3, k4 = jax.random.split(key, 4)
    two_h = 2 * hidden_dim
    hh = hidden_dim * hidden_dim
    lim1 = 1.0 / (edge_dim ** 0.5)
    lim2 = 1.0 / (two_h ** 0.5)
    # Stored transposed vs. torch (in_features, out_features) so kernel does x @ W.
    w1 = jax.random.uniform(k1, (edge_dim, two_h), dtype, -lim1, lim1)
    b1 = jax.random.uniform(k2, (two_h,), dtype, -lim1, lim1)
    w2 = jax.random.uniform(k3, (two_h, hh), dtype, -lim2, lim2)
    b2 = jax.random.uniform(k4, (hh,), dtype, -lim2, lim2)
    return w1, b1, w2, b2


if __name__ == "__main__":
    batch_size = 2
    n_max = 8
    edge_dim = 4
    hidden_dim = 8

    key = jax.random.PRNGKey(0)
    k_edges, k_params = jax.random.split(key)

    edges = jax.random.normal(
        k_edges, (batch_size, n_max, n_max, edge_dim), dtype=jnp.float32)
    w1, b1, w2, b2 = init_params(k_params, edge_dim, hidden_dim)

    # Default (f32 writeback) path.
    out = embed_edge(edges, w1, b1, w2, b2)
    out = jax.block_until_ready(out)

    # Pure-JAX reference of the same math.
    x = edges.reshape(-1, edge_dim)
    ref = jnp.tanh(jax.nn.sigmoid(x @ w1 + b1) @ w2 + b2).reshape(
        batch_size, n_max, n_max, hidden_dim, hidden_dim)

    assert out.shape == (batch_size, n_max, n_max, hidden_dim, hidden_dim)
    assert jnp.allclose(out, ref, atol=1e-4, rtol=1e-4), \
        float(jnp.max(jnp.abs(out - ref)))

    # bf16 writeback path (halves output HBM traffic; f32 accumulation kept).
    out_bf16 = jax.block_until_ready(
        embed_edge(edges, w1, b1, w2, b2, out_dtype=jnp.bfloat16))
    assert jnp.allclose(out_bf16.astype(jnp.float32), ref, atol=1e-2, rtol=1e-2)

    print("KERNEL_OK")
</pallas_src>

<mosaic_0001>
module attributes {stable_mosaic.version = 11 : i64} {
  func.func @embed_edge_kernel(%arg0: i32, %arg1: memref<8x8xf32, #tpu.memory_space<vmem>>, %arg2: memref<8x32xf32, #tpu.memory_space<vmem>>, %arg3: memref<1x32xf32, #tpu.memory_space<vmem>>, %arg4: memref<32x128xf32, #tpu.memory_space<vmem>>, %arg5: memref<1x128xf32, #tpu.memory_space<vmem>>, %arg6: memref<8x128xf32, #tpu.memory_space<vmem>>) attributes {dimension_semantics = [#tpu.dimension_semantics<parallel>], iteration_bounds = array<i64: 8>, scalar_prefetch = 0 : i64, scratch_operands = 0 : i64, tpu.core_type = #tpu.core_type<tc>, window_params = [{transform_indices = @transform_0, window_bounds = array<i64: 8, 8>}, {pipeline_mode = #tpu.pipeline_mode<synchronous>, transform_indices = @transform_1, window_bounds = array<i64: 8, 32>}, {pipeline_mode = #tpu.pipeline_mode<synchronous>, transform_indices = @transform_2, window_bounds = array<i64: 1, 32>}, {pipeline_mode = #tpu.pipeline_mode<synchronous>, transform_indices = @transform_3, window_bounds = array<i64: 32, 128>}, {pipeline_mode = #tpu.pipeline_mode<synchronous>, transform_indices = @transform_4, window_bounds = array<i64: 1, 128>}, {transform_indices = @transform_5, window_bounds = array<i64: 8, 128>}]} {
    %c0 = arith.constant 0 : index
    %c0_0 = arith.constant 0 : index
    %0 = vector.load %arg1[%c0, %c0_0] : memref<8x8xf32, #tpu.memory_space<vmem>>, vector<8x8xf32>
    %c0_1 = arith.constant 0 : index
    %c0_2 = arith.constant 0 : index
    %1 = vector.load %arg2[%c0_1, %c0_2] : memref<8x32xf32, #tpu.memory_space<vmem>>, vector<8x32xf32>
    %cst = arith.constant dense<0.000000e+00> : vector<8x32xf32>
    %2 = tpu.matmul %0, %1, %cst {dimension_numbers = #tpu.dot_dimension_numbers<[1], [0], [0], [1], [0, 0, 1, 1], [], []>} : vector<8x8xf32>, vector<8x32xf32>, vector<8x32xf32> -> vector<8x32xf32>
    %c0_3 = arith.constant 0 : index
    %c0_4 = arith.constant 0 : index
    %3 = vector.load %arg3[%c0_3, %c0_4] : memref<1x32xf32, #tpu.memory_space<vmem>>, vector<1x32xf32>
    %4 = vector.broadcast %3 : vector<1x32xf32> to vector<8x32xf32>
    %5 = arith.addf %2, %4 : vector<8x32xf32>
    %cst_5 = arith.constant 5.000000e-01 : f32
    %6 = vector.broadcast %cst_5 : f32 to vector<8x32xf32>
    %7 = arith.mulf %6, %5 : vector<8x32xf32>
    %8 = math.tanh %7 : vector<8x32xf32>
    %cst_6 = arith.constant 1.000000e+00 : f32
    %9 = vector.broadcast %cst_6 : f32 to vector<8x32xf32>
    %10 = arith.addf %8, %9 : vector<8x32xf32>
    %cst_7 = arith.constant 5.000000e-01 : f32
    %11 = vector.broadcast %cst_7 : f32 to vector<8x32xf32>
    %12 = arith.mulf %11, %10 : vector<8x32xf32>
    %c0_8 = arith.constant 0 : index
    %c0_9 = arith.constant 0 : index
    %13 = vector.load %arg4[%c0_8, %c0_9] : memref<32x128xf32, #tpu.memory_space<vmem>>, vector<32x128xf32>
    %cst_10 = arith.constant dense<0.000000e+00> : vector<8x128xf32>
    %14 = tpu.matmul %12, %13, %cst_10 {dimension_numbers = #tpu.dot_dimension_numbers<[1], [0], [0], [1], [0, 0, 1, 1], [], []>} : vector<8x32xf32>, vector<32x128xf32>, vector<8x128xf32> -> vector<8x128xf32>
    %c0_11 = arith.constant 0 : index
    %c0_12 = arith.constant 0 : index
    %15 = vector.load %arg5[%c0_11, %c0_12] : memref<1x128xf32, #tpu.memory_space<vmem>>, vector<1x128xf32>
    %16 = vector.broadcast %15 : vector<1x128xf32> to vector<8x128xf32>
    %17 = arith.addf %14, %16 : vector<8x128xf32>
    %18 = math.tanh %17 : vector<8x128xf32>
    %c0_13 = arith.constant 0 : index
    %c0_14 = arith.constant 0 : index
    %19 = vector.load %arg6[%c0_13, %c0_14] : memref<8x128xf32, #tpu.memory_space<vmem>>, vector<8x128xf32>
    tpu.vector_store %arg6[%c0_13, %c0_14], %18 {strides = array<i32>} : memref<8x128xf32, #tpu.memory_space<vmem>>, vector<8x128xf32>,
    return
  }
  func.func @transform_0(%arg0: i32) -> (i32, i32) {
    %c0_i32 = arith.constant 0 : i32
    %c0_i32_0 = arith.constant 0 : i32
    return %arg0, %c0_i32 : i32, i32
  }
  func.func @transform_1(%arg0: i32) -> (i32, i32) {
    %c0_i32 = arith.constant 0 : i32
    %c0_i32_0 = arith.constant 0 : i32
    %c0_i32_1 = arith.constant 0 : i32
    return %c0_i32, %c0_i32_0 : i32, i32
  }
  func.func @transform_2(%arg0: i32) -> (i32, i32) {
    %c0_i32 = arith.constant 0 : i32
    %c0_i32_0 = arith.constant 0 : i32
    %c0_i32_1 = arith.constant 0 : i32
    return %c0_i32, %c0_i32_0 : i32, i32
  }
  func.func @transform_3(%arg0: i32) -> (i32, i32) {
    %c0_i32 = arith.constant 0 : i32
    %c0_i32_0 = arith.constant 0 : i32
    %c0_i32_1 = arith.constant 0 : i32
    return %c0_i32, %c0_i32_0 : i32, i32
  }
  func.func @transform_4(%arg0: i32) -> (i32, i32) {
    %c0_i32 = arith.constant 0 : i32
    %c0_i32_0 = arith.constant 0 : i32
    %c0_i32_1 = arith.constant 0 : i32
    return %c0_i32, %c0_i32_0 : i32, i32
  }
  func.func @transform_5(%arg0: i32) -> (i32, i32) {
    %c0_i32 = arith.constant 0 : i32
    %c0_i32_0 = arith.constant 0 : i32
    return %arg0, %c0_i32 : i32, i32
  }
}

</mosaic_0001>

<bundles_post_ra>
// kernel: tpu_custom_call.1
= control target key start
LH: loop header
LB: loop body
LE: loop exit
PB: predicated region body
PF: predicated region fallthrough
CT: control target
= control target key end

     0   :  { %10 = vsyncpa [#allocation3], 0  ;;  %s775_s0 = inlined_call_operand.vmem [shape: f32[64,8], index: 0, kind: input, shape index: {}]   ;;  %s776_s1 = inlined_call_operand.vmem [shape: f32[8,32], index: 1, kind: input, shape index: {}]   ;;  %s777_s2 = inlined_call_operand.vmem [shape: f32[1,32], index: 2, kind: input, shape index: {}]   ;;  %s778_s3 = inlined_call_operand.vmem [shape: f32[32,128], index: 3, kind: input, shape index: {}]   ;;  %s779_s4 = inlined_call_operand.vmem [shape: f32[1,128], index: 4, kind: input, shape index: {}]   ;;  %s780_s5 = inlined_call_operand.hbm [shape: f32[64,128], index: 5, kind: output, shape index: {}]  }
   0x1   :  { %12 = vsyncpa [#allocation3 + $0x1], 0  ;;  %s654_s18 = smov 0   ;;  %s656_s19 = smov 0  }
   0x2   :  { %s658_s20 = smov 0   ;;  %s660_s21 = smov 0  }
   0x3 LB: > { %s675_s22 = sadd.s32 4294967295, %s618_s21   ;;  %s467_s23 = sadd.s32 4294967294, %s618_s21   ;;  %s618_s21 = sphi %s660_s21, %s786_s21   ;;  %s614_s20 = sphi %s658_s20, %s785_s20   ;;  %s610_s19 = sphi %s656_s19, %s784_s19   ;;  %s606_s18 = sphi %s654_s18, %s783_s18  }
   0x4   : > { %s679_s24 = sadd.s32 1, %s618_s21   ;;  %s135_s25 = sadd.s32 1, %s614_s20 }
   0x5   : > { %s132_s26 = ssub.s32 %s618_s21, %s679_s24  ;;  %p145_p0 = scmp.ne.s32.totalorder %s614_s20, %s610_s19 }
   0x6   : > { %p133_p1 = scmp.eq.s32.totalorder %s132_s26, 0  ;;  %p146_p2 = scmp.eq.s32.totalorder %s675_s22, 7 }
   0x7   : > { %p151_p3 = scmp.ne.s32.totalorder %s610_s19, %s606_s18  ;;  %p152_p4 = scmp.eq.s32.totalorder %s467_s23, 7 }
   0x8   : > { %s690_s27 = scalar_select %p133_p1, %s614_s20, %s135_s25  }
   0x9   : > { %p692_p5 = por %p146_p2, %p145_p0  ;;  %p696_p6 = por %p152_p4, %p151_p3 }
   0xa   : > { %p470_p7 = scmp.ge.s32.totalorder %s618_s21, 1  ;;  %p189_p8 = scmp.lt.s32.totalorder %s618_s21, 9 }
   0xc   : > { %p190_p9 = pnand %p470_p7, %p189_p8 }
   0xd   : > { %v221_v0 = vld [vmem:[%s776_s1] sm:$0xff] (!%p190_p9)  ;;  %p216_p10 = scmp.lt.s32.totalorder (!%p190_p9), %s675_s22, 7  ;;  %v620_v1 = vmov (!%p190_p9), 0.0   ;;  %vm621_vm0 = vmmov (!%p190_p9), 0   ;;  %vm229_vm1 = vcmask (!%p190_p9), 64512   ;;  %v308_v4 = vld [vmem:[%s778_s3 + $0x8] sm:$0xff] (!%p190_p9) }
   0xe   : > { %193 = sbr.rel (%p190_p9) target bundleno = 496 (0x1f0), region = 40  ;;  %488 = vmatprep.subr.mxu0 (!%p190_p9), %v620_v1  ;;  %490 = vmatprep.mubr.msk.f32.mxu0 (!%p190_p9), %vm621_vm0, %v620_v1  ;;  %v307_v3 = vld [vmem:[%s778_s3] sm:$0xff] (!%p190_p9)  ;;  %v622_v6 = vmov (!%p190_p9), 0.0|0.0   ;;  %v309_v7 = vld [vmem:[%s778_s3 + $0x10] sm:$0xff] (!%p190_p9)  ;;  %v310_v8 = vld [vmem:[%s778_s3 + $0x18] sm:$0xff] (!%p190_p9)  ;;  %vm318_vm2 = vcmask (!%p190_p9), 261120  }
   0xf   : > { %489 = vmatpush3.msra.mxu0 (!%p190_p9), %v221_v0  ;;  %501 = vmatprep.mubr.msk.f32.mxu1 (!%p190_p9), %vm621_vm0, %v620_v1  ;;  %v505_v5 = vpack.c.bf16 (!%p190_p9), %v308_v4, %v307_v3  ;;  %v508_v9 = vpack.c.bf16 (!%p190_p9), %v310_v8, %v309_v7  ;;  %v473_v10 = vld [vmem:[%s777_s2] ss:$0 sm:$0xff] (!%p190_p9)  ;;  %s478_s10 = sshll.u32 (!%p190_p9), %s675_s22, 7 }
  0x10   : > { %504 = vmatprep.subr.bf16.mxu1 (!%p190_p9), %v622_v6  ;;  %v475_v18 = vld [vmem:[%s779_s4] ss:$0 sm:$0xff] (!%p190_p9)  ;;  %s733_s15 = scalar_lea.hbm (!%p190_p9), %s780_s5, %s478_s10 }
  0x11   : > { %506 = vmatpush3.bf16.msra.mxu1 (!%p190_p9), %v505_v5 }
  0x12   : > { %507 = vmatprep.subr.bf16.mxu1 (!%p190_p9), %v622_v6 }
  0x15   : > { %s217_s7 = scalar_select %p216_p10, %s675_s22, 7  ;;  %509 = vmatpush3.bf16.msra.mxu1 %v508_v9 }
  0x16   : > { %s623_s22 = smov [#allocation2]  }
  0x17   : > { %s472_s8 = sshll.u32 %s217_s7, 3  ;;  %s560_s23 = sshll.u32 %s623_s22, 4  ;;  %s561_s23 = int_to_ptr.vmem [resolvable:$false] %s560_s23 }
  0x18   : > { %s219_s11 = scalar_lea.vmem %s775_s0, %s472_s8  ;;  %s213_s8 = sand.u32 1, %s610_s19  }
  0x19   : > { %v220_v2 = vld [vmem:[%s219_s11] sm:$0xff]  ;;  %s471_s9 = sshll.u32 %s213_s8, 3  ;;  %s395_s16 = scalar_lea.sflag [#allocation3], %s213_s8 }
  0x1a   : > { %491 = vmatmul.mubr.msk.f32.vlgmr.msra.gmra.mrb[0].mxu0 %vm229_vm1, %v220_v2  ;;  %s215_s11 = scalar_lea.vmem [#allocation2], %s471_s9  ;;  %s562_s25 = scalar_lea.vmem %s561_s23, 256 }
  0x1b   : > { %s408_s12 = sshll.u32 %s215_s11, 4  ;;  %s735_s12 = int_to_ptr.vmem [resolvable:$true] %s408_s12 }
  0x1c   : > { %s556_s17 = scalar_lea.vmem %s735_s12, 128  ;;  %p563_p0 = scmp.lt.s32.totalorder %s735_s12, %s561_s23 }
  0x1d   : > { %p557_p11 = scmp.ne.s32.totalorder %s735_s12, %s556_s17  ;;  %p564_p1 = scmp.lt.s32.totalorder %s562_s25, %s556_s17 }
  0x1f   : > { %p558_p12 = pnand %p557_p11, %p692_p5  ;;  %p565_p2 = por %p564_p1, %p563_p0 }
  0x21   : > { %p559_p13 = pneg %p558_p12 }
  0x23   : > { %p566_p3 = pnand %p565_p2, %p559_p13 }
  0xed   : > { %v299_v11 = vpop.f32.mrb[0].mxu0 }
  0xee   : > { %v300_v12 = vadd.f32 %v473_v10, %v299_v11  ;;  %v492_v13 = vpop.f32.mrb[1].mxu0 }
  0xf0   : > { %v303_v14 = vmul.f32 0.5, %v300_v12 }
  0xf2   : > { %552 = vtanh.f32 %v303_v14 }
  0xfc   : > { %v553_v15 = vpop.eup %552 }
  0xfd   : > { %v305_v16 = vadd.f32 1.0, %v553_v15 }
  0xff   : > { %v306_v17 = vmul.f32 0.5, %v305_v16 }
 0x101   : > { %502 = vmatmul.mubr.msk.f32.vlgmr.msra.gmra.mrb[0].mxu1 %vm318_vm2, %v306_v17 }
 0x1d4   : > { %v388_v19 = vpop.f32.mrb[0].mxu1 }
 0x1d5   : > { %v389_v20 = vadd.f32 %v475_v18, %v388_v19  ;;  %v503_v21 = vpop.f32.mrb[1].mxu1 }
 0x1d7   : > { %554 = vtanh.f32 %v389_v20 }
 0x1e1   : > { %v555_v22 = vpop.eup %554 }
 0x1e2   : > { %393 = vst [vmem:[%s215_s11] sm:$0xff] %v555_v22 }
 0x1e3   : > { %569 = shalt.err (!%p566_p3)
}
 0x1e4   : > { %s570_s26 = scalar_lea.hbm %s733_s15, 128  ;;  %s574_s7 = scalar_lea.hbm %s780_s5, 1024 }
 0x1e5   : > { %p571_p4 = scmp.ne.s32.totalorder %s733_s15, %s570_s26  ;;  %p575_p9 = scmp.lt.u32.totalorder %s733_s15, %s780_s5 }
 0x1e6   : > { %p576_p10 = scmp.lt.u32.totalorder %s574_s7, %s570_s26  ;;  %p578_p12 = scmp.lt.u32.totalorder %s570_s26, %s733_s15 }
 0x1e7   : > { %p572_p7 = pnand %p571_p4, %p692_p5 }
 0x1e8   : > { %p577_p11 = por %p576_p10, %p575_p9 }
 0x1e9   : > { %p573_p8 = pneg %p572_p7 }
 0x1ea   : > { %p579_p13 = por %p578_p12, %p577_p11 }
 0x1ec   : > { %p580_p0 = pnand %p579_p13, %p573_p8 }
 0x1ee   : > { %583 = shalt.err (!%p580_p0)
}
 0x1ef   : > { %510 = dma.vmem_to_hbm [thread:$0]  (%p692_p5), %s735_s12, 128, %s733_s15, %s395_s16  }
 0x1f0 PF: > { %p516_p1 = scmp.ge.s32.totalorder %s618_s21, 2  ;;  %s420_s10 = sand.u32 1, %s606_s18  }
 0x1f1   : > { %s421_s11 = scalar_lea.sflag [#allocation3], %s420_s10 }
 0x1f2   : > { %p513_p2 = pnand %p516_p1, %p696_p6 }
 0x1f4   : > { %601 = dma.done.wait (!%p513_p2), %s421_s11, 128  }
 0x1f5   : > { %603 = vsyncadd (!%p513_p2), %s421_s11, 4294967168  ;;  %p15_p3 = scmp.ge.s32.totalorder %s679_s24, 10   ;;  %s783_s18 = smov %s610_s19 }
 0x1f6   : > { %s784_s19 = smov %s614_s20  ;;  %s785_s20 = smov %s690_s27 }
 0x1f7   : > { %s786_s21 = smov %s679_s24  ;;  %17 = sbr.rel (!%p15_p3) target bundleno = 3 (0x3), region = 75 }
 0x1fe   :  { %426 = vsyncpa [#allocation3], 1 }
 0x1ff   :  { %428 = vsyncpa [#allocation3 + $0x1], 1 }

</bundles_post_ra>
